<compile_context>
chip_gen: v6e
topology: v6e:2x2x1
jax: 0.10.0
libtpu: 0.0.40
codegen_flags: <defaults>
</compile_context>

<pallas_src>
import math

import jax
import jax.numpy as jnp
import numpy as np
from jax.experimental import pallas as pl
from jax.experimental.pallas import tpu as pltpu


# ----------------------------------------------------------------------------
# Gabor filter bank (matches the module's generate_gabor_filters / gabor_cmplx)
# ----------------------------------------------------------------------------
# TODO(synk): exact gabor_cmplx formula is not included in the spec; using the
# standard complex Gabor (sigma = pi, params[0] = theta, params[1] = frequency).
def gabor_cmplx_filters(params, kh, kw, sigma=math.pi):
    """params: [2, no_g] -> filters [2, no_g, kh, kw] (real, imag)."""
    theta = params[0][:, None, None]                      # [no_g, 1, 1]
    freq = params[1][:, None, None]                       # [no_g, 1, 1]
    y, x = jnp.meshgrid(
        jnp.arange(-kh / 2 + 0.5, kh / 2, dtype=jnp.float32),
        jnp.arange(-kw / 2 + 0.5, kw / 2, dtype=jnp.float32),
        indexing="ij",
    )
    x_r = x * jnp.cos(theta) + y * jnp.sin(theta)
    y_r = -x * jnp.sin(theta) + y * jnp.cos(theta)
    env = jnp.exp(-(x_r ** 2 + y_r ** 2) / (2.0 * sigma ** 2))
    phase = freq * x_r
    real = env * jnp.cos(phase)
    imag = env * jnp.sin(phase)
    return jnp.stack([real, imag], axis=0)                # [2, no_g, kh, kw]


# ----------------------------------------------------------------------------
# Pallas kernel: broadcast-modulate one (c, o_tile) block of x by filter row g
# ----------------------------------------------------------------------------
def _igabor_modulate_kernel(x_ref, filt_ref, out_ref):
    # x_ref:    [TO, K]      (one tile of x for complex component c)
    # filt_ref: [no_g, K]    (all filter rows for component c, VMEM-resident)
    # out_ref:  [TO, K]      (output tile for (c, g, o_tile))
    g = pl.program_id(2)
    f = filt_ref[pl.ds(g, 1), :]                          # [1, K] — sublane broadcast below
    out_ref[...] = (x_ref[...] * f).astype(out_ref.dtype)


def _pick_tile(n, cap=512):
    if n <= cap:
        return n
    for t in (512, 256, 128, 64, 32, 16, 8):
        if n % t == 0:
            return t
    return n


def igabor_cmplx_pallas(x, gabor_params):
    """x: [2, C_out, C_in, kh, kw], gabor_params: [2, no_g]
    -> [2, no_g*C_out, C_in, kh, kw] (identical for layer=False / layer=True)."""
    assert x.shape[0] == 2 and gabor_params.shape[0] == 2
    _, c_out, c_in, kh, kw = x.shape
    no_g = gabor_params.shape[1]
    dtype = x.dtype
    K = c_in * kh * kw

    # Filter bank (tiny): [2, no_g, kh, kw] -> broadcast over C_in -> [2, no_g, K]
    filt = gabor_cmplx_filters(gabor_params, kh, kw).astype(dtype)
    filt_b = jnp.broadcast_to(
        filt[:, :, None, :, :], (2, no_g, c_in, kh, kw)
    ).reshape(2, no_g, K)

    # Lane-dense activation view: [2, C_out, K]
    x_flat = x.reshape(2, c_out, K)

    TO = _pick_tile(c_out)
    grid = (2, c_out // TO, no_g)   # g innermost: x tile stays resident across filters

    out = pl.pallas_call(
        _igabor_modulate_kernel,
        out_shape=jax.ShapeDtypeStruct((2, no_g, c_out, K), dtype),
        grid=grid,
        in_specs=[
            pl.BlockSpec((None, TO, K), lambda c, o, g: (c, o, 0)),      # x
            pl.BlockSpec((None, no_g, K), lambda c, o, g: (c, 0, 0)),    # filters
        ],
        out_specs=pl.BlockSpec((None, None, TO, K), lambda c, o, g: (c, g, o, 0)),
        compiler_params=pltpu.CompilerParams(
            dimension_semantics=("parallel", "parallel", "arbitrary"),
        ),
    )(x_flat, filt_b)

    # [2, no_g, C_out, K] -> [2, no_g*C_out, C_in, kh, kw]  (contiguous, free reshape)
    return out.reshape(2, no_g * c_out, c_in, kh, kw)


# ----------------------------------------------------------------------------
# Pure-JAX reference of the PyTorch forward
# ----------------------------------------------------------------------------
def igabor_cmplx_ref(x, gabor_params):
    kh, kw = x.shape[-2:]
    filt = gabor_cmplx_filters(gabor_params, kh, kw).astype(x.dtype)
    # gabor_filters [2, no_g, 1, 1, kh, kw] * x.unsqueeze(1) [2, 1, C_out, C_in, kh, kw]
    out = filt[:, :, None, None, :, :] * x[:, None]
    return out.reshape(2, -1, *x.shape[2:])


if __name__ == "__main__":
    # Small shapes consistent with the module (x is a complex conv-weight-like tensor).
    NO_G, C_OUT, C_IN, KSIZE = 4, 8, 4, 3
    key = jax.random.PRNGKey(0)
    k_x, k_l = jax.random.split(key)

    x = jax.random.normal(k_x, (2, C_OUT, C_IN, KSIZE, KSIZE), dtype=jnp.float32)

    # Parameter init mimicking the module:
    #   params[0] = arange(no_g)/no_g * pi ; params[1] ~ U(-1/sqrt(no_g), 1/sqrt(no_g))
    theta = jnp.arange(NO_G, dtype=jnp.float32) / NO_G * math.pi
    lam = jax.random.uniform(
        k_l, (NO_G,), minval=-1.0 / math.sqrt(NO_G), maxval=1.0 / math.sqrt(NO_G),
        dtype=jnp.float32,
    )
    gabor_params = jnp.stack([theta, lam], axis=0)   # [2, no_g]

    out = jax.jit(igabor_cmplx_pallas)(x, gabor_params)
    out = jax.block_until_ready(out)

    ref = igabor_cmplx_ref(x, gabor_params)
    np.testing.assert_allclose(np.asarray(out), np.asarray(ref), rtol=1e-5, atol=1e-5)
    print("KERNEL_OK")
</pallas_src>

<mosaic_0001>
module attributes {stable_mosaic.version = 11 : i64} {
  func.func @_igabor_modulate_kernel(%arg0: i32, %arg1: i32, %arg2: i32, %arg3: memref<1x8x36xf32, #tpu.memory_space<vmem>>, %arg4: memref<1x4x36xf32, #tpu.memory_space<vmem>>, %arg5: memref<1x1x8x36xf32, #tpu.memory_space<vmem>>) attributes {dimension_semantics = [#tpu.dimension_semantics<parallel>, #tpu.dimension_semantics<parallel>, #tpu.dimension_semantics<arbitrary>], iteration_bounds = array<i64: 2, 1, 4>, scalar_prefetch = 0 : i64, scratch_operands = 0 : i64, tpu.core_type = #tpu.core_type<tc>, window_params = [{transform_indices = @transform_0, window_bounds = array<i64: 1, 8, 36>}, {transform_indices = @transform_1, window_bounds = array<i64: 1, 4, 36>}, {transform_indices = @transform_2, window_bounds = array<i64: 1, 1, 8, 36>}]} {
    %c0 = arith.constant 0 : index
    %0 = arith.index_cast %arg2 : i32 to index
    %c0_0 = arith.constant 0 : index
    %1 = vector.load %arg4[%c0, %0, %c0_0] : memref<1x4x36xf32, #tpu.memory_space<vmem>>, vector<1x1x36xf32>
    %2 = vector.shape_cast %1 : vector<1x1x36xf32> to vector<1x36xf32>
    %c0_1 = arith.constant 0 : index
    %c0_2 = arith.constant 0 : index
    %c0_3 = arith.constant 0 : index
    %3 = vector.load %arg3[%c0_1, %c0_2, %c0_3] : memref<1x8x36xf32, #tpu.memory_space<vmem>>, vector<1x8x36xf32>
    %4 = vector.shape_cast %3 : vector<1x8x36xf32> to vector<8x36xf32>
    %5 = vector.broadcast %2 : vector<1x36xf32> to vector<8x36xf32>
    %6 = arith.mulf %4, %5 : vector<8x36xf32>
    %c0_4 = arith.constant 0 : index
    %c0_5 = arith.constant 0 : index
    %c0_6 = arith.constant 0 : index
    %c0_7 = arith.constant 0 : index
    %7 = vector.load %arg5[%c0_4, %c0_5, %c0_6, %c0_7] : memref<1x1x8x36xf32, #tpu.memory_space<vmem>>, vector<1x1x8x36xf32>
    %8 = vector.shape_cast %7 : vector<1x1x8x36xf32> to vector<8x36xf32>
    %9 = vector.shape_cast %6 : vector<8x36xf32> to vector<1x1x8x36xf32>
    tpu.vector_store %arg5[%c0_4, %c0_5, %c0_6, %c0_7], %9 {strides = array<i32>} : memref<1x1x8x36xf32, #tpu.memory_space<vmem>>, vector<1x1x8x36xf32>,
    return
  }
  func.func @transform_0(%arg0: i32, %arg1: i32, %arg2: i32) -> (i32, i32, i32) {
    %c0_i32 = arith.constant 0 : i32
    %c0_i32_0 = arith.constant 0 : i32
    return %arg0, %arg1, %c0_i32 : i32, i32, i32
  }
  func.func @transform_1(%arg0: i32, %arg1: i32, %arg2: i32) -> (i32, i32, i32) {
    %c0_i32 = arith.constant 0 : i32
    %c0_i32_0 = arith.constant 0 : i32
    %c0_i32_1 = arith.constant 0 : i32
    return %arg0, %c0_i32, %c0_i32_0 : i32, i32, i32
  }
  func.func @transform_2(%arg0: i32, %arg1: i32, %arg2: i32) -> (i32, i32, i32, i32) {
    %c0_i32 = arith.constant 0 : i32
    %c0_i32_0 = arith.constant 0 : i32
    return %arg0, %arg2, %arg1, %c0_i32 : i32, i32, i32, i32
  }
}

</mosaic_0001>

<bundles_post_ra>
// kernel: igabor_cmplx_pallas.1
= control target key start
LH: loop header
LB: loop body
LE: loop exit
PB: predicated region body
PF: predicated region fallthrough
CT: control target
= control target key end

     0   :  { %s430_s9 = smov 0   ;;  %s432_s10 = smov 0   ;;  %s478_s0 = inlined_call_operand.vmem [shape: f32[2,8,36], index: 0, kind: input, shape index: {}]   ;;  %s479_s1 = inlined_call_operand.vmem [shape: f32[2,4,36], index: 1, kind: input, shape index: {}]   ;;  %s480_s2 = inlined_call_operand.vmem [shape: f32[2,4,8,36], index: 2, kind: output, shape index: {}]  }
   0x1   :  { %s434_s11 = smov 0   ;;  %s436_s12 = smov 0  }
   0x2   :  { %s438_s13 = smov 0  }
   0x3 LB: > { %s24_s14 = sadd.s32 1, %s405_s11  ;;  %s31_s15 = sadd.s32 1, %s409_s12  ;;  %s413_s13 = sphi %s438_s13, %s12_s13   ;;  %s409_s12 = sphi %s436_s12, %s484_s12   ;;  %s405_s11 = sphi %s434_s11, %s483_s11   ;;  %s401_s10 = sphi %s432_s10, %s482_s10   ;;  %s397_s9 = sphi %s430_s9, %s481_s9  }
   0x4   : > { %p25_p0 = scmp.ge.s32.totalorder %s24_s14, 4  ;;  %p327_p1 = scmp.ge.s32.totalorder %s413_s13, 1 }
   0x5   : > { %p148_p2 = scmp.lt.s32.totalorder %s413_s13, 9 }
   0x6   : > { %s486_s14 = smov (%p25_p0, %s24_s14), 0  ;;  %s488_s15 = smov (!%p25_p0, %s31_s15), %s409_s12 }
   0x7   : > { %p149_p3 = pnand %p327_p1, %p148_p2  ;;  %p33_p4 = scmp.ge.s32.totalorder %s488_s15, 2 }
   0x8   : > { %p182_p5 = scmp.lt.s32.totalorder (!%p149_p3), %s401_s10, 1  ;;  %p195_p6 = scmp.lt.s32.totalorder (!%p149_p3), %s397_s9, 3 }
   0x9   : > { %s490_s15 = smov (%p33_p4, %s488_s15), 0  ;;  %152 = sbr.rel (%p149_p3) target bundleno = 23 (0x17), region = 28 }
   0xe   : > { %s492_s10 = smov (!%p182_p5, %s401_s10), 1  ;;  %vm212_vm0 = vcmask 293888  }
   0xf   : > { %s196_s16 = scalar_select %p195_p6, %s397_s9, 3 }
  0x10   : > { %s328_s17 = sshll.u32 %s492_s10, 3  ;;  %s329_s18 = sshll.u32 %s492_s10, 2 }
  0x11   : > { %s188_s21 = scalar_lea.vmem %s478_s0, %s328_s17  ;;  %s192_s24 = scalar_lea.vmem %s479_s1, %s329_s18 }
  0x12   : > { %s201_s25 = sadd.s32 %s329_s18, %s196_s16  ;;  %s204_s26 = scalar_lea.vmem %s192_s24, %s397_s9  ;;  %v206_v0 = vld [vmem:[%s188_s21] sm:$0xff] }
  0x13   : > { %s331_s27 = sshll.u32 %s201_s25, 3  ;;  %v332_v1 = vld [vmem:[%s204_s26] ss:$0 sm:$0xff] }
  0x14   : > { %s203_s30 = scalar_lea.vmem %s480_s2, %s331_s27  ;;  %v211_v2 = vmul.f32 %v332_v1, %v206_v0 }
  0x16   : > { %213 = vst.msk [vmem:[%s203_s30] sm:$0xff] %vm212_vm0, %v211_v2 }
  0x17 PF: > { %s12_s13 = sadd.s32 1, %s413_s13   ;;  %s481_s9 = smov %s405_s11 }
  0x18   : > { %p9_p7 = scmp.ge.s32.totalorder %s12_s13, 10   ;;  %s482_s10 = smov %s409_s12 }
  0x19   : > { %s483_s11 = smov %s486_s14  ;;  %s484_s12 = smov %s490_s15 }
  0x1a   :  { %11 = sbr.rel (!%p9_p7) target bundleno = 3 (0x3), region = 62 }

</bundles_post_ra>
